<compile_context>
chip_gen: v5e
topology: v5e:2x2
jax: 0.10.0
libtpu: 0.0.40
codegen_flags: <defaults>
</compile_context>

<pallas_src>
import numpy as np
import jax
import jax.numpy as jnp
from jax.experimental import pallas as pl
from jax.experimental.pallas import tpu as pltpu


def _round_up(x, m):
    return ((x + m - 1) // m) * m


def _vmem_capacity_bytes():
    """Per-TensorCore VMEM capacity; conservative fallback if the query is unavailable."""
    try:
        info = pltpu.get_tpu_info()
        cap = getattr(info, "vmem_capacity_bytes", None)
        if cap:
            return int(cap)
    except Exception:
        pass
    return 64 * 1024 * 1024  # v7x per-TC physical VMEM (smallest current generation)


def fnn_kernel(x_ref, w1_ref, b1_ref, w2_ref, b2_ref, w3_ref, b3_ref, o_ref):
    # x_ref:  (TM, IN)    f32  (cast to bf16 in-kernel; feature axis unpadded)
    # w1_ref: (IN, H_P)   bf16    b1_ref: (1, H_P)   f32
    # w2_ref: (H_P, H_P)  bf16    b2_ref: (1, H_P)   f32
    # w3_ref: (H_P, OUT_P)bf16    b3_ref: (1, OUT_P) f32
    # o_ref:  (TM, OUT_P) out dtype
    x = x_ref[...].astype(jnp.bfloat16)

    h1 = jnp.dot(x, w1_ref[...], preferred_element_type=jnp.float32) + b1_ref[...]
    h1 = jnp.maximum(h1, 0.0).astype(jnp.bfloat16)

    h2 = jnp.dot(h1, w2_ref[...], preferred_element_type=jnp.float32) + b2_ref[...]
    h2 = jnp.maximum(h2, 0.0).astype(jnp.bfloat16)

    out = jnp.dot(h2, w3_ref[...], preferred_element_type=jnp.float32) + b3_ref[...]
    o_ref[...] = out.astype(o_ref.dtype)


def prepare_fnn_params(w1, b1, w2, b2, w3, b3):
    """One-time parameter prep: transpose (out,in)->(in,out), zero-pad only the OUTPUT
    feature dims to multiples of 128 (lane-dense; the first matmul's K stays at the real
    input size), cast weights to bf16, keep biases f32. Zero padding is exact: padded
    lanes contribute 0 through every layer and are sliced off at the end.
    (128 alignment is native for the v5e MXU; only align to 256 for v6e/v7x when the real
    dims are already close to a 256 multiple -- not the case at these sizes.)"""
    in_size, hidden_size, output_size = w1.shape[1], w1.shape[0], w3.shape[0]
    h_p = _round_up(hidden_size, 128)
    out_p = _round_up(output_size, 128)

    def pad_wt(w, rows, cols):
        wt = w.T  # (in, out)
        return jnp.pad(wt, ((0, rows - wt.shape[0]), (0, cols - wt.shape[1]))).astype(jnp.bfloat16)

    def pad_b(b, cols):
        return jnp.pad(b, (0, cols - b.shape[0])).reshape(1, cols).astype(jnp.float32)

    return {
        "w1": pad_wt(w1, in_size, h_p), "b1": pad_b(b1, h_p),
        "w2": pad_wt(w2, h_p, h_p),     "b2": pad_b(b2, h_p),
        "w3": pad_wt(w3, h_p, out_p),   "b3": pad_b(b3, out_p),
        "in_size": in_size, "out_size": output_size,
        "h_p": h_p, "out_p": out_p,
    }


def fnn_forward(x, params, tm=512, out_dtype=jnp.float32):
    """x: any shape whose trailing dims flatten to input_size (matches x.view(-1, input_size))."""
    in_size, out_size = params["in_size"], params["out_size"]
    h_p, out_p = params["h_p"], params["out_p"]

    x2d = x.reshape(-1, in_size)
    if x2d.dtype != jnp.float32:
        x2d = x2d.astype(jnp.float32)
    B = x2d.shape[0]

    # Batch tile: force a multiple of 8 (sublane) and clamp so tiny batches aren't over-padded.
    tm = max(8, _round_up(int(tm), 8))
    tm = min(tm, _round_up(B, 8))
    n_tiles = pl.cdiv(B, tm)
    b_p = n_tiles * tm

    # Pad ONLY the batch axis; the feature axis keeps the real in_size and the f32->bf16
    # cast happens inside the kernel (no separate host-side pad+cast pass over x).
    xp = x2d if b_p == B else jnp.pad(x2d, ((0, b_p - B), (0, 0)))

    out_itemsize = np.dtype(out_dtype).itemsize
    w_bytes = 2 * (in_size * h_p + h_p * h_p + h_p * out_p)  # bf16 weights
    bias_bytes = 4 * (2 * h_p + out_p)                        # f32 biases

    # Cost hint for the XLA scheduler.
    flops = 2 * b_p * (in_size * h_p + h_p * h_p + h_p * out_p)
    bytes_accessed = b_p * in_size * 4 + w_bytes + bias_bytes + b_p * out_p * out_itemsize
    cost = pl.CostEstimate(flops=int(flops), transcendentals=0,
                           bytes_accessed=int(bytes_accessed))

    def call(single_buffer_weights):
        # Constant blocks (index_map never changes): request a single pipeline buffer.
        const_kwargs = {}
        if single_buffer_weights and hasattr(pl, "Buffered"):
            const_kwargs = {"pipeline_mode": pl.Buffered(1)}

        def const_spec(shape):
            return pl.BlockSpec(shape, lambda i: (0, 0), **const_kwargs)

        # VMEM budget: weights/biases resident once (twice on fallback), x/out tiles
        # double-buffered by the pipeline, f32 + bf16 copies of the h1/h2 intermediates.
        w_mult = 1 if const_kwargs else 2
        need = (w_mult * (w_bytes + bias_bytes)
                + 2 * (4 * tm * in_size + out_itemsize * tm * out_p)
                + 2 * tm * h_p * (4 + 2))
        vmem_limit = int(min(max(2 * need, 16 * 1024 * 1024),
                             int(0.85 * _vmem_capacity_bytes())))

        return pl.pallas_call(
            fnn_kernel,
            out_shape=jax.ShapeDtypeStruct((b_p, out_p), out_dtype),
            grid_spec=pltpu.PrefetchScalarGridSpec(
                num_scalar_prefetch=0,
                grid=(n_tiles,),
                in_specs=[
                    pl.BlockSpec((tm, in_size), lambda i: (i, 0)),  # x: walks the batch axis
                    const_spec((in_size, h_p)),                     # weights/biases stay resident
                    const_spec((1, h_p)),
                    const_spec((h_p, h_p)),
                    const_spec((1, h_p)),
                    const_spec((h_p, out_p)),
                    const_spec((1, out_p)),
                ],
                out_specs=pl.BlockSpec((tm, out_p), lambda i: (i, 0)),
            ),
            compiler_params=pltpu.CompilerParams(
                # Batch tiles are independent -> megacore-shardable on v7x. (On v7x, verify
                # with xprof that both TCs run; if not, switch this axis to pltpu.CORE_PARALLEL.)
                dimension_semantics=("parallel",),
                vmem_limit_bytes=vmem_limit,
            ),
            cost_estimate=cost,
        )(xp, params["w1"], params["b1"], params["w2"], params["b2"],
          params["w3"], params["b3"])

    try:
        out = call(True)
    except Exception:
        # Older JAX builds may reject Buffered(1) on a pallas_call BlockSpec; fall back
        # to default double-buffering (correctness identical, just more resident VMEM).
        out = call(False)

    return out[:B, :out_size]


def init_linear(key, in_features, out_features, dtype=jnp.float32):
    """Deterministic init mimicking nn.Linear's uniform(-1/sqrt(in), 1/sqrt(in))."""
    kw, kb = jax.random.split(key)
    bound = 1.0 / jnp.sqrt(float(in_features))
    w = jax.random.uniform(kw, (out_features, in_features), dtype, -bound, bound)
    b = jax.random.uniform(kb, (out_features,), dtype, -bound, bound)
    return w, b


if __name__ == "__main__":
    input_size, hidden_size, output_size = 32, 64, 16
    batch = 300  # not a multiple of the tile -> exercises batch padding + multi-tile grid

    key = jax.random.PRNGKey(0)
    k_x, k1, k2, k3 = jax.random.split(key, 4)

    x = jax.random.normal(k_x, (batch, input_size), jnp.float32)
    w1, b1 = init_linear(k1, input_size, hidden_size)
    w2, b2 = init_linear(k2, hidden_size, hidden_size)
    w3, b3 = init_linear(k3, hidden_size, output_size)

    params = prepare_fnn_params(w1, b1, w2, b2, w3, b3)  # one-time transpose/pad/cast

    out_multi = fnn_forward(x, params, tm=128)   # 3 batch tiles (multi-step pipeline)
    out_single = fnn_forward(x, params)          # default tm=512 -> clamped to 304, 1 tile
    jax.block_until_ready((out_multi, out_single))
    assert out_multi.shape == (batch, output_size)
    assert out_single.shape == (batch, output_size)

    # Reference 1: bf16 matmul inputs, f32 accumulation (matches kernel arithmetic).
    def ref_bf16(x):
        xb = x.astype(jnp.bfloat16)
        h = jnp.maximum(jnp.dot(xb, w1.T.astype(jnp.bfloat16),
                                preferred_element_type=jnp.float32) + b1, 0.0)
        h = jnp.maximum(jnp.dot(h.astype(jnp.bfloat16), w2.T.astype(jnp.bfloat16),
                                preferred_element_type=jnp.float32) + b2, 0.0)
        return jnp.dot(h.astype(jnp.bfloat16), w3.T.astype(jnp.bfloat16),
                       preferred_element_type=jnp.float32) + b3

    ref_b = ref_bf16(x)
    assert jnp.allclose(out_multi, ref_b, atol=2e-3, rtol=2e-3)
    assert jnp.allclose(out_single, ref_b, atol=2e-3, rtol=2e-3)

    # Reference 2: pure-f32 module semantics (loose tolerance for bf16 matmul inputs).
    h = jnp.maximum(x @ w1.T + b1, 0.0)
    h = jnp.maximum(h @ w2.T + b2, 0.0)
    ref_f32 = h @ w3.T + b3
    assert jnp.allclose(out_multi, ref_f32, atol=5e-2, rtol=5e-2)
    assert jnp.allclose(out_single, ref_f32, atol=5e-2, rtol=5e-2)

    print("KERNEL_OK")
</pallas_src>

<mosaic_0001>
module attributes {stable_mosaic.version = 11 : i64} {
  func.func @fnn_kernel(%arg0: i32, %arg1: memref<128x32xf32, #tpu.memory_space<vmem>>, %arg2: memref<32x128xbf16, #tpu.memory_space<vmem>>, %arg3: memref<1x128xf32, #tpu.memory_space<vmem>>, %arg4: memref<128x128xbf16, #tpu.memory_space<vmem>>, %arg5: memref<1x128xf32, #tpu.memory_space<vmem>>, %arg6: memref<128x128xbf16, #tpu.memory_space<vmem>>, %arg7: memref<1x128xf32, #tpu.memory_space<vmem>>, %arg8: memref<128x128xf32, #tpu.memory_space<vmem>>) attributes {dimension_semantics = [#tpu.dimension_semantics<parallel>], iteration_bounds = array<i64: 3>, scalar_prefetch = 0 : i64, scratch_operands = 0 : i64, tpu.core_type = #tpu.core_type<tc>, window_params = [{transform_indices = @transform_0, window_bounds = array<i64: 128, 32>}, {pipeline_mode = #tpu.pipeline_mode<synchronous>, transform_indices = @transform_1, window_bounds = array<i64: 32, 128>}, {pipeline_mode = #tpu.pipeline_mode<synchronous>, transform_indices = @transform_2, window_bounds = array<i64: 1, 128>}, {pipeline_mode = #tpu.pipeline_mode<synchronous>, transform_indices = @transform_3, window_bounds = array<i64: 128, 128>}, {pipeline_mode = #tpu.pipeline_mode<synchronous>, transform_indices = @transform_4, window_bounds = array<i64: 1, 128>}, {pipeline_mode = #tpu.pipeline_mode<synchronous>, transform_indices = @transform_5, window_bounds = array<i64: 128, 128>}, {pipeline_mode = #tpu.pipeline_mode<synchronous>, transform_indices = @transform_6, window_bounds = array<i64: 1, 128>}, {transform_indices = @transform_7, window_bounds = array<i64: 128, 128>}]} {
    %c0 = arith.constant 0 : index
    %c0_0 = arith.constant 0 : index
    %0 = vector.load %arg1[%c0, %c0_0] : memref<128x32xf32, #tpu.memory_space<vmem>>, vector<128x32xf32>
    %1 = arith.truncf %0 : vector<128x32xf32> to vector<128x32xbf16>
    %c0_1 = arith.constant 0 : index
    %c0_2 = arith.constant 0 : index
    %2 = vector.load %arg2[%c0_1, %c0_2] : memref<32x128xbf16, #tpu.memory_space<vmem>>, vector<32x128xbf16>
    %cst = arith.constant dense<0.000000e+00> : vector<128x128xf32>
    %3 = tpu.matmul %1, %2, %cst {dimension_numbers = #tpu.dot_dimension_numbers<[1], [0], [0], [1], [0, 0, 1, 1], [], []>} : vector<128x32xbf16>, vector<32x128xbf16>, vector<128x128xf32> -> vector<128x128xf32>
    %c0_3 = arith.constant 0 : index
    %c0_4 = arith.constant 0 : index
    %4 = vector.load %arg3[%c0_3, %c0_4] : memref<1x128xf32, #tpu.memory_space<vmem>>, vector<1x128xf32>
    %5 = vector.broadcast %4 : vector<1x128xf32> to vector<128x128xf32>
    %6 = arith.addf %3, %5 : vector<128x128xf32>
    %cst_5 = arith.constant 0.000000e+00 : f32
    %7 = vector.broadcast %cst_5 : f32 to vector<128x128xf32>
    %8 = arith.maximumf %6, %7 : vector<128x128xf32>
    %9 = arith.truncf %8 : vector<128x128xf32> to vector<128x128xbf16>
    %c0_6 = arith.constant 0 : index
    %c0_7 = arith.constant 0 : index
    %10 = vector.load %arg4[%c0_6, %c0_7] : memref<128x128xbf16, #tpu.memory_space<vmem>>, vector<128x128xbf16>
    %cst_8 = arith.constant dense<0.000000e+00> : vector<128x128xf32>
    %11 = tpu.matmul %9, %10, %cst_8 {dimension_numbers = #tpu.dot_dimension_numbers<[1], [0], [0], [1], [0, 0, 1, 1], [], []>} : vector<128x128xbf16>, vector<128x128xbf16>, vector<128x128xf32> -> vector<128x128xf32>
    %c0_9 = arith.constant 0 : index
    %c0_10 = arith.constant 0 : index
    %12 = vector.load %arg5[%c0_9, %c0_10] : memref<1x128xf32, #tpu.memory_space<vmem>>, vector<1x128xf32>
    %13 = vector.broadcast %12 : vector<1x128xf32> to vector<128x128xf32>
    %14 = arith.addf %11, %13 : vector<128x128xf32>
    %cst_11 = arith.constant 0.000000e+00 : f32
    %15 = vector.broadcast %cst_11 : f32 to vector<128x128xf32>
    %16 = arith.maximumf %14, %15 : vector<128x128xf32>
    %17 = arith.truncf %16 : vector<128x128xf32> to vector<128x128xbf16>
    %c0_12 = arith.constant 0 : index
    %c0_13 = arith.constant 0 : index
    %18 = vector.load %arg6[%c0_12, %c0_13] : memref<128x128xbf16, #tpu.memory_space<vmem>>, vector<128x128xbf16>
    %cst_14 = arith.constant dense<0.000000e+00> : vector<128x128xf32>
    %19 = tpu.matmul %17, %18, %cst_14 {dimension_numbers = #tpu.dot_dimension_numbers<[1], [0], [0], [1], [0, 0, 1, 1], [], []>} : vector<128x128xbf16>, vector<128x128xbf16>, vector<128x128xf32> -> vector<128x128xf32>
    %c0_15 = arith.constant 0 : index
    %c0_16 = arith.constant 0 : index
    %20 = vector.load %arg7[%c0_15, %c0_16] : memref<1x128xf32, #tpu.memory_space<vmem>>, vector<1x128xf32>
    %21 = vector.broadcast %20 : vector<1x128xf32> to vector<128x128xf32>
    %22 = arith.addf %19, %21 : vector<128x128xf32>
    %c0_17 = arith.constant 0 : index
    %c0_18 = arith.constant 0 : index
    %23 = vector.load %arg8[%c0_17, %c0_18] : memref<128x128xf32, #tpu.memory_space<vmem>>, vector<128x128xf32>
    tpu.vector_store %arg8[%c0_17, %c0_18], %22 {strides = array<i32>} : memref<128x128xf32, #tpu.memory_space<vmem>>, vector<128x128xf32>,
    return
  }
  func.func @transform_0(%arg0: i32) -> (i32, i32) {
    %c0_i32 = arith.constant 0 : i32
    %c0_i32_0 = arith.constant 0 : i32
    return %arg0, %c0_i32 : i32, i32
  }
  func.func @transform_1(%arg0: i32) -> (i32, i32) {
    %c0_i32 = arith.constant 0 : i32
    %c0_i32_0 = arith.constant 0 : i32
    %c0_i32_1 = arith.constant 0 : i32
    return %c0_i32, %c0_i32_0 : i32, i32
  }
  func.func @transform_2(%arg0: i32) -> (i32, i32) {
    %c0_i32 = arith.constant 0 : i32
    %c0_i32_0 = arith.constant 0 : i32
    %c0_i32_1 = arith.constant 0 : i32
    return %c0_i32, %c0_i32_0 : i32, i32
  }
  func.func @transform_3(%arg0: i32) -> (i32, i32) {
    %c0_i32 = arith.constant 0 : i32
    %c0_i32_0 = arith.constant 0 : i32
    %c0_i32_1 = arith.constant 0 : i32
    return %c0_i32, %c0_i32_0 : i32, i32
  }
  func.func @transform_4(%arg0: i32) -> (i32, i32) {
    %c0_i32 = arith.constant 0 : i32
    %c0_i32_0 = arith.constant 0 : i32
    %c0_i32_1 = arith.constant 0 : i32
    return %c0_i32, %c0_i32_0 : i32, i32
  }
  func.func @transform_5(%arg0: i32) -> (i32, i32) {
    %c0_i32 = arith.constant 0 : i32
    %c0_i32_0 = arith.constant 0 : i32
    %c0_i32_1 = arith.constant 0 : i32
    return %c0_i32, %c0_i32_0 : i32, i32
  }
  func.func @transform_6(%arg0: i32) -> (i32, i32) {
    %c0_i32 = arith.constant 0 : i32
    %c0_i32_0 = arith.constant 0 : i32
    %c0_i32_1 = arith.constant 0 : i32
    return %c0_i32, %c0_i32_0 : i32, i32
  }
  func.func @transform_7(%arg0: i32) -> (i32, i32) {
    %c0_i32 = arith.constant 0 : i32
    %c0_i32_0 = arith.constant 0 : i32
    return %arg0, %c0_i32 : i32, i32
  }
}

module attributes {stable_mosaic.version = 11 : i64} {
  func.func @fnn_kernel(%arg0: i32, %arg1: memref<128x32xf32, #tpu.memory_space<vmem>>, %arg2: memref<32x128xbf16, #tpu.memory_space<vmem>>, %arg3: memref<1x128xf32, #tpu.memory_space<vmem>>, %arg4: memref<128x128xbf16, #tpu.memory_space<vmem>>, %arg5: memref<1x128xf32, #tpu.memory_space<vmem>>, %arg6: memref<128x128xbf16, #tpu.memory_space<vmem>>, %arg7: memref<1x128xf32, #tpu.memory_space<vmem>>, %arg8: memref<128x128xf32, #tpu.memory_space<vmem>>) attributes {dimension_semantics = [#tpu.dimension_semantics<parallel>], iteration_bounds = array<i64: 3>, scalar_prefetch = 0 : i64, scratch_operands = 0 : i64, tpu.core_type = #tpu.core_type<tc>, window_params = [{transform_indices = @transform_0, window_bounds = array<i64: 128, 32>}, {pipeline_mode = #tpu.pipeline_mode<synchronous>, transform_indices = @transform_1, window_bounds = array<i64: 32, 128>}, {pipeline_mode = #tpu.pipeline_mode<synchronous>, transform_indices = @transform_2, window_bounds = array<i64: 1, 128>}, {pipeline_mode = #tpu.pipeline_mode<synchronous>, transform_indices = @transform_3, window_bounds = array<i64: 128, 128>}, {pipeline_mode = #tpu.pipeline_mode<synchronous>, transform_indices = @transform_4, window_bounds = array<i64: 1, 128>}, {pipeline_mode = #tpu.pipeline_mode<synchronous>, transform_indices = @transform_5, window_bounds = array<i64: 128, 128>}, {pipeline_mode = #tpu.pipeline_mode<synchronous>, transform_indices = @transform_6, window_bounds = array<i64: 1, 128>}, {transform_indices = @transform_7, window_bounds = array<i64: 128, 128>}]} {
    %c0 = arith.constant 0 : index
    %c0_0 = arith.constant 0 : index
    %0 = vector.load %arg1[%c0, %c0_0] : memref<128x32xf32, #tpu.memory_space<vmem>>, vector<128x32xf32>
    %1 = arith.truncf %0 : vector<128x32xf32> to vector<128x32xbf16>
    %c0_1 = arith.constant 0 : index
    %c0_2 = arith.constant 0 : index
    %2 = vector.load %arg2[%c0_1, %c0_2] : memref<32x128xbf16, #tpu.memory_space<vmem>>, vector<32x128xbf16>
    %cst = arith.constant dense<0.000000e+00> : vector<128x128xf32>
    %3 = tpu.matmul %1, %2, %cst {dimension_numbers = #tpu.dot_dimension_numbers<[1], [0], [0], [1], [0, 0, 1, 1], [], []>} : vector<128x32xbf16>, vector<32x128xbf16>, vector<128x128xf32> -> vector<128x128xf32>
    %c0_3 = arith.constant 0 : index
    %c0_4 = arith.constant 0 : index
    %4 = vector.load %arg3[%c0_3, %c0_4] : memref<1x128xf32, #tpu.memory_space<vmem>>, vector<1x128xf32>
    %5 = vector.broadcast %4 : vector<1x128xf32> to vector<128x128xf32>
    %6 = arith.addf %3, %5 : vector<128x128xf32>
    %cst_5 = arith.constant 0.000000e+00 : f32
    %7 = vector.broadcast %cst_5 : f32 to vector<128x128xf32>
    %8 = arith.maximumf %6, %7 : vector<128x128xf32>
    %9 = arith.truncf %8 : vector<128x128xf32> to vector<128x128xbf16>
    %c0_6 = arith.constant 0 : index
    %c0_7 = arith.constant 0 : index
    %10 = vector.load %arg4[%c0_6, %c0_7] : memref<128x128xbf16, #tpu.memory_space<vmem>>, vector<128x128xbf16>
    %cst_8 = arith.constant dense<0.000000e+00> : vector<128x128xf32>
    %11 = tpu.matmul %9, %10, %cst_8 {dimension_numbers = #tpu.dot_dimension_numbers<[1], [0], [0], [1], [0, 0, 1, 1], [], []>} : vector<128x128xbf16>, vector<128x128xbf16>, vector<128x128xf32> -> vector<128x128xf32>
    %c0_9 = arith.constant 0 : index
    %c0_10 = arith.constant 0 : index
    %12 = vector.load %arg5[%c0_9, %c0_10] : memref<1x128xf32, #tpu.memory_space<vmem>>, vector<1x128xf32>
    %13 = vector.broadcast %12 : vector<1x128xf32> to vector<128x128xf32>
    %14 = arith.addf %11, %13 : vector<128x128xf32>
    %cst_11 = arith.constant 0.000000e+00 : f32
    %15 = vector.broadcast %cst_11 : f32 to vector<128x128xf32>
    %16 = arith.maximumf %14, %15 : vector<128x128xf32>
    %17 = arith.truncf %16 : vector<128x128xf32> to vector<128x128xbf16>
    %c0_12 = arith.constant 0 : index
    %c0_13 = arith.constant 0 : index
    %18 = vector.load %arg6[%c0_12, %c0_13] : memref<128x128xbf16, #tpu.memory_space<vmem>>, vector<128x128xbf16>
    %cst_14 = arith.constant dense<0.000000e+00> : vector<128x128xf32>
    %19 = tpu.matmul %17, %18, %cst_14 {dimension_numbers = #tpu.dot_dimension_numbers<[1], [0], [0], [1], [0, 0, 1, 1], [], []>} : vector<128x128xbf16>, vector<128x128xbf16>, vector<128x128xf32> -> vector<128x128xf32>
    %c0_15 = arith.constant 0 : index
    %c0_16 = arith.constant 0 : index
    %20 = vector.load %arg7[%c0_15, %c0_16] : memref<1x128xf32, #tpu.memory_space<vmem>>, vector<1x128xf32>
    %21 = vector.broadcast %20 : vector<1x128xf32> to vector<128x128xf32>
    %22 = arith.addf %19, %21 : vector<128x128xf32>
    %c0_17 = arith.constant 0 : index
    %c0_18 = arith.constant 0 : index
    %23 = vector.load %arg8[%c0_17, %c0_18] : memref<128x128xf32, #tpu.memory_space<vmem>>, vector<128x128xf32>
    tpu.vector_store %arg8[%c0_17, %c0_18], %22 {strides = array<i32>} : memref<128x128xf32, #tpu.memory_space<vmem>>, vector<128x128xf32>,
    return
  }
  func.func @transform_0(%arg0: i32) -> (i32, i32) {
    %c0_i32 = arith.constant 0 : i32
    %c0_i32_0 = arith.constant 0 : i32
    return %arg0, %c0_i32 : i32, i32
  }
  func.func @transform_1(%arg0: i32) -> (i32, i32) {
    %c0_i32 = arith.constant 0 : i32
    %c0_i32_0 = arith.constant 0 : i32
    %c0_i32_1 = arith.constant 0 : i32
    return %c0_i32, %c0_i32_0 : i32, i32
  }
  func.func @transform_2(%arg0: i32) -> (i32, i32) {
    %c0_i32 = arith.constant 0 : i32
    %c0_i32_0 = arith.constant 0 : i32
    %c0_i32_1 = arith.constant 0 : i32
    return %c0_i32, %c0_i32_0 : i32, i32
  }
  func.func @transform_3(%arg0: i32) -> (i32, i32) {
    %c0_i32 = arith.constant 0 : i32
    %c0_i32_0 = arith.constant 0 : i32
    %c0_i32_1 = arith.constant 0 : i32
    return %c0_i32, %c0_i32_0 : i32, i32
  }
  func.func @transform_4(%arg0: i32) -> (i32, i32) {
    %c0_i32 = arith.constant 0 : i32
    %c0_i32_0 = arith.constant 0 : i32
    %c0_i32_1 = arith.constant 0 : i32
    return %c0_i32, %c0_i32_0 : i32, i32
  }
  func.func @transform_5(%arg0: i32) -> (i32, i32) {
    %c0_i32 = arith.constant 0 : i32
    %c0_i32_0 = arith.constant 0 : i32
    %c0_i32_1 = arith.constant 0 : i32
    return %c0_i32, %c0_i32_0 : i32, i32
  }
  func.func @transform_6(%arg0: i32) -> (i32, i32) {
    %c0_i32 = arith.constant 0 : i32
    %c0_i32_0 = arith.constant 0 : i32
    %c0_i32_1 = arith.constant 0 : i32
    return %c0_i32, %c0_i32_0 : i32, i32
  }
  func.func @transform_7(%arg0: i32) -> (i32, i32) {
    %c0_i32 = arith.constant 0 : i32
    %c0_i32_0 = arith.constant 0 : i32
    return %arg0, %c0_i32 : i32, i32
  }
}

</mosaic_0001>

<bundles_post_ra>
// kernel: tpu_custom_call.1
= control target key start
LH: loop header
LB: loop body
LE: loop exit
PB: predicated region body
PF: predicated region fallthrough
CT: control target
= control target key end

     0   :  { %12 = vsyncpa [#allocation3], 0  ;;  %s1266_s0 = inlined_call_operand.vmem [shape: f32[384,32], index: 0, kind: input, shape index: {}]   ;;  %s1267_s1 = inlined_call_operand.vmem [shape: bf16[32,128], index: 1, kind: input, shape index: {}]   ;;  %s1268_s2 = inlined_call_operand.vmem [shape: f32[1,128], index: 2, kind: input, shape index: {}]   ;;  %s1269_s3 = inlined_call_operand.vmem [shape: bf16[128,128], index: 3, kind: input, shape index: {}]   ;;  %s1270_s4 = inlined_call_operand.vmem [shape: f32[1,128], index: 4, kind: input, shape index: {}]   ;;  %s1271_s5 = inlined_call_operand.vmem [shape: bf16[128,128], index: 5, kind: input, shape index: {}]   ;;  %s1272_s6 = inlined_call_operand.vmem [shape: f32[1,128], index: 6, kind: input, shape index: {}]   ;;  %s1273_s7 = inlined_call_operand.hbm [shape: f32[384,128], index: 7, kind: output, shape index: {}]  }
   0x1   :  { %14 = vsyncpa [#allocation3 + $0x1], 0  ;;  %s1052_s24 = smov 0   ;;  %s1054_s25 = smov 0  }
   0x2   :  { %s1056_s26 = smov 0   ;;  %s1058_s27 = smov 0  }
   0x3 LB: > { %s1073_s28 = sadd.s32 4294967295, %s1008_s27   ;;  %s775_s29 = sadd.s32 4294967294, %s1008_s27   ;;  %s1008_s27 = sphi %s1058_s27, %s1279_s27   ;;  %s1004_s26 = sphi %s1056_s26, %s1278_s26   ;;  %s1000_s25 = sphi %s1054_s25, %s1277_s25   ;;  %s996_s24 = sphi %s1052_s24, %s1276_s24  }
   0x4   : > { %s1077_s30 = sadd.s32 1, %s1008_s27   ;;  %s179_s8 = sadd.s32 1, %s1004_s26 }
   0x5   : > { %s176_s9 = ssub.s32 %s1008_s27, %s1077_s30  ;;  %p189_p0 = scmp.ne.s32.totalorder %s1004_s26, %s1000_s25 }
   0x6   : > { %p177_p1 = scmp.eq.s32.totalorder %s176_s9, 0  ;;  %p190_p2 = scmp.eq.s32.totalorder %s1073_s28, 2 }
   0x7   : > { %p195_p3 = scmp.ne.s32.totalorder %s1000_s25, %s996_s24  ;;  %p196_p4 = scmp.eq.s32.totalorder %s775_s29, 2 }
   0x8   : > { %s1088_s10 = scalar_select %p177_p1, %s1004_s26, %s179_s8  }
   0x9   : > { %p1090_p5 = por %p190_p2, %p189_p0  ;;  %p1094_p6 = por %p196_p4, %p195_p3 }
   0xa   : > { %p778_p7 = scmp.ge.s32.totalorder %s1008_s27, 1  ;;  %p241_p8 = scmp.lt.s32.totalorder %s1008_s27, 4 }
   0xc   : > { %p242_p9 = pnand %p778_p7, %p241_p8 }
   0xd   : > { %s780_s15 = sshll.u32 (!%p242_p9), %s1073_s28, 4  ;;  %s270_s16 = sand.u32 (!%p242_p9), 1, %s1000_s25  }
   0xe   : > { %245 = sbr.rel (%p242_p9) target bundleno = 571 (0x23b), region = 48  ;;  %p274_p10 = scmp.lt.s32.totalorder (!%p242_p9), %s780_s15, 47 }
   0xf   : > { %s779_s17 = sshll.u32 (!%p242_p9), %s270_s16, 7  ;;  %s885_s22 = sshll.u32 (!%p242_p9), %s1073_s28, 7 }
  0x10   : > { %s1214_s20 = scalar_lea.vmem (!%p242_p9), [#allocation2], %s779_s17  ;;  %s709_s8 = scalar_lea.hbm (!%p242_p9), %s1273_s7, %s885_s22 }
  0x11   : > { %s710_s9 = sshll.u32 (!%p242_p9), %s1214_s20, 4  ;;  %s698_s13 = scalar_lea.sflag (!%p242_p9), [#allocation3], %s270_s16  ;;  %s711_s9 = int_to_ptr.vmem [resolvable:$true] %s710_s9 }
  0x13   : > { %v868_v0 = vld [vmem:[%s1267_s1 + $0x8] sm:$0xff]  ;;  %v867_v1 = vld [vmem:[%s1267_s1] sm:$0xff]  ;;  %s1281_s15 = smov (!%p274_p10, %s780_s15), 47  ;;  %vm325_vm0 = vcmask 261120   ;;  %v876_v17 = vld [vmem:[%s1269_s3 + $0x38] sm:$0xff] }
  0x14   : > { %356 = vmatpush.bf16.msra.mxu0 %v868_v0  ;;  %s781_s18 = sshll.u32 %s1281_s15, 3  ;;  %491 = vmatpush.bf16.msra.mxu1 %v876_v17  ;;  %v875_v21 = vld [vmem:[%s1269_s3 + $0x30] sm:$0xff]  ;;  %v874_v22 = vld [vmem:[%s1269_s3 + $0x28] sm:$0xff]  ;;  %v873_v23 = vld [vmem:[%s1269_s3 + $0x20] sm:$0xff] }
  0x15   : > { %s1110_s21 = scalar_lea.vmem %s1266_s0, %s781_s18  ;;  %886 = vmatpush.bf16.msra.mxu3 %v876_v17  ;;  %v872_v26 = vld [vmem:[%s1269_s3 + $0x18] sm:$0xff]  ;;  %v871_v28 = vld [vmem:[%s1269_s3 + $0x10] sm:$0xff]  ;;  %v870_v29 = vld [vmem:[%s1269_s3 + $0x8] sm:$0xff]  ;;  %s966_s18 = scalar_lea.hbm %s1273_s7, 384 }
  0x16   : > { %v281_v2 = vld [vmem:[%s1110_s21] sm:$0xff]  ;;  %v282_v3 = vld [vmem:[%s1110_s21 + $0x8] sm:$0xff]  ;;  %v283_v5 = vld [vmem:[%s1110_s21 + $0x10] sm:$0xff] }
  0x17   : > { %v297_v4 = vpack.c.bf16 %v282_v3, %v281_v2  ;;  %v284_v6 = vld [vmem:[%s1110_s21 + $0x18] sm:$0xff]  ;;  %v285_v8 = vld [vmem:[%s1110_s21 + $0x20] sm:$0xff]  ;;  %v286_v9 = vld [vmem:[%s1110_s21 + $0x28] sm:$0xff] }
  0x18   : > { %357 = vmatpush.bf16.msra.mxu0 %v867_v1  ;;  %v298_v7 = vpack.c.bf16 %v284_v6, %v283_v5  ;;  %v299_v10 = vpack.c.bf16 %v286_v9, %v285_v8  ;;  %v287_v11 = vld [vmem:[%s1110_s21 + $0x30] sm:$0xff]  ;;  %v288_v12 = vld [vmem:[%s1110_s21 + $0x38] sm:$0xff]  ;;  %v289_v14 = vld [vmem:[%s1110_s21 + $0x40] sm:$0xff]  ;;  %492 = vmatpush.bf16.msra.mxu1 %v875_v21 }
  0x19   : > { %v300_v13 = vpack.c.bf16 %v288_v12, %v287_v11  ;;  %v290_v15 = vld [vmem:[%s1110_s21 + $0x48] sm:$0xff]  ;;  %v291_v18 = vld [vmem:[%s1110_s21 + $0x50] sm:$0xff]  ;;  %v292_v19 = vld [vmem:[%s1110_s21 + $0x58] sm:$0xff]  ;;  %887 = vmatpush.bf16.msra.mxu3 %v875_v21 }
  0x1a   : > { %v301_v16 = vpack.c.bf16 %v290_v15, %v289_v14  ;;  %v302_v20 = vpack.c.bf16 %v292_v19, %v291_v18  ;;  %v293_v24 = vld [vmem:[%s1110_s21 + $0x60] sm:$0xff]  ;;  %v294_v25 = vld [vmem:[%s1110_s21 + $0x68] sm:$0xff]  ;;  %v295_v31 = vld [vmem:[%s1110_s21 + $0x70] sm:$0xff] }
  0x1b   : > { %790 = vmatmul.msk.bf16.vlgmr.msra.gmra.mxu0 %vm325_vm0, %v297_v4  ;;  %v303_v27 = vpack.c.bf16 %v294_v25, %v293_v24  ;;  %v869_v30 = vld [vmem:[%s1269_s3] sm:$0xff]  ;;  %v296_v32 = vld [vmem:[%s1110_s21 + $0x78] sm:$0xff]  ;;  %v883_v14 = vld [vmem:[%s1271_s5 + $0x30] sm:$0xff]  ;;  %s712_s21 = sshll.u32 %s709_s8, 4  ;;  %s713_s21 = int_to_ptr.hbm [resolvable:$true] %s712_s21 }
  0x1c   : > { %493 = vmatpush.bf16.msra.mxu1 %v874_v22  ;;  %v304_v33 = vpack.c.bf16 %v296_v32, %v295_v31  ;;  %v1163_v35 = vld [vmem:[%s1268_s2] ss:$0 sm:$0xff]  ;;  %v880_v21 = vld [vmem:[%s1271_s5 + $0x18] sm:$0xff]  ;;  %v879_v25 = vld [vmem:[%s1271_s5 + $0x10] sm:$0xff]  ;;  %s960_s14 = sshra.s32 %s713_s21, 4  ;;  %s961_s14 = int_to_ptr.hbm [resolvable:$true] %s960_s14 }
  0x1d   : > { %888 = vmatpush.bf16.msra.mxu3 %v874_v22  ;;  %v881_v17 = vld [vmem:[%s1271_s5 + $0x20] sm:$0xff]  ;;  %s962_s28 = scalar_lea.hbm %s961_s14, 128  ;;  %p967_p0 = scmp.lt.s32.totalorder %s961_s14, %s1273_s7 }
  0x1e   : > { %p963_p11 = scmp.ne.s32.totalorder %s961_s14, %s962_s28  ;;  %p968_p1 = scmp.lt.s32.totalorder %s966_s18, %s962_s28 }
  0x20   : > { %494 = vmatpush.bf16.msra.mxu1 %v873_v23  ;;  %p964_p12 = pnand %p963_p11, %p1090_p5  ;;  %p969_p2 = por %p968_p1, %p967_p0 }
  0x21   : > { %889 = vmatpush.bf16.msra.mxu3 %v873_v23 }
  0x22   : > { %p965_p13 = pneg %p964_p12 }
  0x24   : > { %495 = vmatpush.bf16.msra.mxu1 %v872_v26  ;;  %p970_p3 = pnand %p969_p2, %p965_p13 }
  0x25   : > { %890 = vmatpush.bf16.msra.mxu3 %v872_v26 }
  0x28   : > { %496 = vmatpush.bf16.msra.mxu1 %v871_v28 }
  0x29   : > { %891 = vmatpush.bf16.msra.mxu3 %v871_v28  ;;  %v877_v28 = vld [vmem:[%s1271_s5] sm:$0xff] }
  0x2b   : > { %791 = vmatmul.msk.bf16.gmra.mxu0 %vm325_vm0, %v298_v7 }
  0x2c   : > { %497 = vmatpush.bf16.msra.mxu1 %v870_v29 }
  0x2d   : > { %892 = vmatpush.bf16.msra.mxu3 %v870_v29 }
  0x30   : > { %498 = vmatpush.bf16.msra.mxu1 %v869_v30 }
  0x31   : > { %893 = vmatpush.bf16.msra.mxu3 %v869_v30 }
  0x3b   : > { %792 = vmatmul.msk.bf16.gmra.mxu0 %vm325_vm0, %v299_v10  ;;  %v884_v10 = vld [vmem:[%s1271_s5 + $0x38] sm:$0xff] }
  0x3c   : > { %632 = vmatpush.bf16.msra.mxu2 %v884_v10  ;;  %894 = vmatpush.bf16.msrb.mxu3 %v884_v10 }
  0x40   : > { %633 = vmatpush.bf16.msra.mxu2 %v883_v14  ;;  %895 = vmatpush.bf16.msrb.mxu3 %v883_v14 }
  0x4b   : > { %793 = vmatmul.msk.bf16.gmra.mxu0 %vm325_vm0, %v300_v13 }
  0x5b   : > { %794 = vmatmul.msk.bf16.gmra.mxu0 %vm325_vm0, %v301_v16  ;;  %v882_v16 = vld [vmem:[%s1271_s5 + $0x28] sm:$0xff] }
  0x5c   : > { %634 = vmatpush.bf16.msra.mxu2 %v882_v16  ;;  %896 = vmatpush.bf16.msrb.mxu3 %v882_v16 }
  0x60   : > { %635 = vmatpush.bf16.msra.mxu2 %v881_v17  ;;  %897 = vmatpush.bf16.msrb.mxu3 %v881_v17 }
  0x64   : > { %636 = vmatpush.bf16.msra.mxu2 %v880_v21  ;;  %898 = vmatpush.bf16.msrb.mxu3 %v880_v21 }
  0x68   : > { %637 = vmatpush.bf16.msra.mxu2 %v879_v25  ;;  %899 = vmatpush.bf16.msrb.mxu3 %v879_v25 }
  0x6b   : > { %795 = vmatmul.msk.bf16.gmra.mxu0 %vm325_vm0, %v302_v20 }
  0x7b   : > { %796 = vmatmul.msk.bf16.gmra.mxu0 %vm325_vm0, %v303_v27  ;;  %v878_v27 = vld [vmem:[%s1271_s5 + $0x8] sm:$0xff] }
  0x7c   : > { %638 = vmatpush.bf16.msra.mxu2 %v878_v27  ;;  %900 = vmatpush.bf16.msrb.mxu3 %v878_v27 }
  0x80   : > { %639 = vmatpush.bf16.msra.mxu2 %v877_v28  ;;  %901 = vmatpush.bf16.msrb.mxu3 %v877_v28  ;;  %v945_v28 = vld [vmem:[%s1272_s6] ss:$0 sm:$0xff] }
  0x8b   : > { %797 = vmatmul.msk.bf16.gmra.mxu0 %vm325_vm0, %v304_v33 }
  0x98   : > { %v359_v34 = vpop.f32.mrf.mxu0 }
  0x99   : > { %v360_v36 = vadd.f32 %v1163_v35, %v359_v34 }
  0x9b   : > { %v399_v39 = vmax.f32 %v360_v36, 0.0 }
  0xa0   : > { %v361_v37 = vpop.f32.mrf.mxu0 }
  0xa1   : > { %v362_v38 = vadd.f32 %v1163_v35, %v361_v37  ;;  %v944_v37 = vld [vmem:[%s1270_s4] ss:$0 sm:$0xff] }
  0xa3   : > { %v400_v40 = vmax.f32 %v362_v38, 0.0 }
  0xa5   : > { %v415_v41 = vpack.c.bf16 %v400_v40, %v399_v39 }
  0xa7   : > { %499 = vmatmul.bf16.vlgmr.msra.gmra.mxu1 %v415_v41 }
  0xa8   : > { %v364_v42 = vpop.f32.mrf.mxu0 }
  0xa9   : > { %v365_v43 = vadd.f32 %v1163_v35, %v364_v42 }
  0xab   : > { %v401_v46 = vmax.f32 %v365_v43, 0.0 }
  0xb0   : > { %v366_v44 = vpop.f32.mrf.mxu0 }
  0xb1   : > { %v367_v45 = vadd.f32 %v1163_v35, %v366_v44 }
  0xb3   : > { %v402_v47 = vmax.f32 %v367_v45, 0.0 }
  0xb5   : > { %v416_v48 = vpack.c.bf16 %v402_v47, %v401_v46 }
  0xb7   : > { %504 = vmatmul.bf16.gmra.mxu1 %v416_v48 }
  0xb8   : > { %v369_v49 = vpop.f32.mrf.mxu0 }
  0xb9   : > { %v370_v50 = vadd.f32 %v1163_v35, %v369_v49 }
  0xbb   : > { %v403_v53 = vmax.f32 %v370_v50, 0.0 }
  0xc0   : > { %v371_v51 = vpop.f32.mrf.mxu0 }
  0xc1   : > { %v372_v52 = vadd.f32 %v1163_v35, %v371_v51 }
  0xc3   : > { %v404_v54 = vmax.f32 %v372_v52, 0.0 }
  0xc5   : > { %v417_v55 = vpack.c.bf16 %v404_v54, %v403_v53 }
  0xc7   : > { %509 = vmatmul.bf16.gmra.mxu1 %v417_v55 }
  0xc8   : > { %v374_v56 = vpop.f32.mrf.mxu0 }
  0xc9   : > { %v375_v57 = vadd.f32 %v1163_v35, %v374_v56 }
  0xcb   : > { %v405_v60 = vmax.f32 %v375_v57, 0.0 }
  0xd0   : > { %v376_v58 = vpop.f32.mrf.mxu0 }
  0xd1   : > { %v377_v59 = vadd.f32 %v1163_v35, %v376_v58 }
  0xd3   : > { %v406_v61 = vmax.f32 %v377_v59, 0.0 }
  0xd5   : > { %v418_v62 = vpack.c.bf16 %v406_v61, %v405_v60 }
  0xd7   : > { %514 = vmatmul.bf16.gmra.mxu1 %v418_v62 }
  0xd8   : > { %v379_v63 = vpop.f32.mrf.mxu0 }
  0xd9   : > { %v380_v0 = vadd.f32 %v1163_v35, %v379_v63 }
  0xdb   : > { %v407_v3 = vmax.f32 %v380_v0, 0.0 }
  0xe0   : > { %v381_v1 = vpop.f32.mrf.mxu0 }
  0xe1   : > { %v382_v2 = vadd.f32 %v1163_v35, %v381_v1 }
  0xe3   : > { %v408_v4 = vmax.f32 %v382_v2, 0.0 }
  0xe5   : > { %v419_v5 = vpack.c.bf16 %v408_v4, %v407_v3 }
  0xe7   : > { %519 = vmatmul.bf16.gmra.mxu1 %v419_v5 }
  0xe8   : > { %v384_v6 = vpop.f32.mrf.mxu0 }
  0xe9   : > { %v385_v7 = vadd.f32 %v1163_v35, %v384_v6 }
  0xeb   : > { %v409_v11 = vmax.f32 %v385_v7, 0.0 }
  0xf0   : > { %v386_v8 = vpop.f32.mrf.mxu0 }
  0xf1   : > { %v387_v9 = vadd.f32 %v1163_v35, %v386_v8 }
  0xf3   : > { %v410_v12 = vmax.f32 %v387_v9, 0.0 }
  0xf5   : > { %v420_v13 = vpack.c.bf16 %v410_v12, %v409_v11 }
  0xf7   : > { %524 = vmatmul.bf16.gmra.mxu1 %v420_v13 }
  0xf8   : > { %v389_v15 = vpop.f32.mrf.mxu0 }
  0xf9   : > { %v390_v18 = vadd.f32 %v1163_v35, %v389_v15 }
  0xfb   : > { %v411_v22 = vmax.f32 %v390_v18, 0.0 }
 0x100   : > { %v391_v19 = vpop.f32.mrf.mxu0 }
 0x101   : > { %v392_v20 = vadd.f32 %v1163_v35, %v391_v19 }
 0x103   : > { %v412_v23 = vmax.f32 %v392_v20, 0.0 }
 0x105   : > { %v421_v24 = vpack.c.bf16 %v412_v23, %v411_v22 }
 0x107   : > { %529 = vmatmul.bf16.vlgmr.msra.gmra.mxu3 %v421_v24 }
 0x108   : > { %v394_v26 = vpop.f32.mrf.mxu0 }
 0x109   : > { %v395_v29 = vadd.f32 %v1163_v35, %v394_v26 }
 0x10b   : > { %v413_v32 = vmax.f32 %v395_v29, 0.0 }
 0x110   : > { %v396_v30 = vpop.f32.mrf.mxu0 }
 0x111   : > { %v397_v31 = vadd.f32 %v1163_v35, %v396_v30 }
 0x113   : > { %v414_v33 = vmax.f32 %v397_v31, 0.0 }
 0x115   : > { %v422_v34 = vpack.c.bf16 %v414_v33, %v413_v32 }
 0x117   : > { %534 = vmatmul.bf16.gmra.mxu3 %v422_v34 }
 0x124   : > { %v500_v36 = vpop.f32.mrf.mxu1 }
 0x125   : > { %v501_v38 = vadd.f32 %v944_v37, %v500_v36 }
 0x127   : > { %v540_v41 = vmax.f32 %v501_v38, 0.0 }
 0x12c   : > { %v502_v39 = vpop.f32.mrf.mxu1 }
 0x12d   : > { %v503_v40 = vadd.f32 %v944_v37, %v502_v39 }
 0x12f   : > { %v541_v42 = vmax.f32 %v503_v40, 0.0 }
 0x131   : > { %v556_v43 = vpack.c.bf16 %v541_v42, %v540_v41 }
 0x133   : > { %640 = vmatmul.bf16.vlgmr.msra.gmra.mxu2 %v556_v43 }
 0x134   : > { %v505_v44 = vpop.f32.mrf.mxu1 }
 0x135   : > { %v506_v45 = vadd.f32 %v944_v37, %v505_v44 }
 0x137   : > { %v542_v47 = vmax.f32 %v506_v45, 0.0 }
 0x13c   : > { %v507_v46 = vpop.f32.mrf.mxu1 }
 0x13d   : > { %v508_v35 = vadd.f32 %v944_v37, %v507_v46 }
 0x13f   : > { %v543_v48 = vmax.f32 %v508_v35, 0.0 }
 0x141   : > { %v557_v49 = vpack.c.bf16 %v543_v48, %v542_v47 }
 0x143   : > { %645 = vmatmul.bf16.gmra.mxu2 %v557_v49 }
 0x144   : > { %v510_v50 = vpop.f32.mrf.mxu1 }
 0x145   : > { %v511_v51 = vadd.f32 %v944_v37, %v510_v50 }
 0x147   : > { %v544_v54 = vmax.f32 %v511_v51, 0.0 }
 0x14c   : > { %v512_v52 = vpop.f32.mrf.mxu1 }
 0x14d   : > { %v513_v53 = vadd.f32 %v944_v37, %v512_v52 }
 0x14f   : > { %v545_v55 = vmax.f32 %v513_v53, 0.0 }
 0x151   : > { %v558_v56 = vpack.c.bf16 %v545_v55, %v544_v54 }
 0x153   : > { %650 = vmatmul.bf16.gmra.mxu2 %v558_v56 }
 0x154   : > { %v515_v57 = vpop.f32.mrf.mxu1 }
 0x155   : > { %v516_v58 = vadd.f32 %v944_v37, %v515_v57 }
 0x157   : > { %v546_v61 = vmax.f32 %v516_v58, 0.0 }
 0x15c   : > { %v517_v59 = vpop.f32.mrf.mxu1 }
 0x15d   : > { %v518_v60 = vadd.f32 %v944_v37, %v517_v59 }
 0x15f   : > { %v547_v62 = vmax.f32 %v518_v60, 0.0 }
 0x161   : > { %v559_v63 = vpack.c.bf16 %v547_v62, %v546_v61 }
 0x163   : > { %655 = vmatmul.bf16.gmra.mxu2 %v559_v63 }
 0x164   : > { %v520_v0 = vpop.f32.mrf.mxu1 }
 0x165   : > { %v521_v1 = vadd.f32 %v944_v37, %v520_v0 }
 0x167   : > { %v548_v4 = vmax.f32 %v521_v1, 0.0 }
 0x16c   : > { %v522_v2 = vpop.f32.mrf.mxu1 }
 0x16d   : > { %v523_v3 = vadd.f32 %v944_v37, %v522_v2 }
 0x16f   : > { %v549_v5 = vmax.f32 %v523_v3, 0.0 }
 0x171   : > { %v560_v6 = vpack.c.bf16 %v549_v5, %v548_v4 }
 0x173   : > { %660 = vmatmul.bf16.gmra.mxu2 %v560_v6 }
 0x174   : > { %v525_v7 = vpop.f32.mrf.mxu1 }
 0x175   : > { %v526_v8 = vadd.f32 %v944_v37, %v525_v7 }
 0x177   : > { %v550_v11 = vmax.f32 %v526_v8, 0.0 }
 0x17c   : > { %v527_v9 = vpop.f32.mrf.mxu1 }
 0x17d   : > { %v528_v10 = vadd.f32 %v944_v37, %v527_v9 }
 0x17f   : > { %v551_v12 = vmax.f32 %v528_v10, 0.0 }
 0x181   : > { %v561_v13 = vpack.c.bf16 %v551_v12, %v550_v11 }
 0x183   : > { %665 = vmatmul.bf16.gmra.mxu2 %v561_v13 }
 0x18a   : > { %v530_v14 = vpop.f32.mrf.mxu3 }
 0x18b   : > { %v531_v15 = vadd.f32 %v944_v37, %v530_v14 }
 0x18d   : > { %v552_v18 = vmax.f32 %v531_v15, 0.0 }
 0x192   : > { %v532_v16 = vpop.f32.mrf.mxu3 }
 0x193   : > { %v533_v17 = vadd.f32 %v944_v37, %v532_v16 }
 0x195   : > { %v553_v19 = vmax.f32 %v533_v17, 0.0 }
 0x197   : > { %v562_v20 = vpack.c.bf16 %v553_v19, %v552_v18 }
 0x199   : > { %670 = vmatmul.bf16.vlgmr.msrb.gmra.mxu3 %v562_v20 }
 0x19a   : > { %v535_v21 = vpop.f32.mrf.mxu3 }
 0x19b   : > { %v536_v22 = vadd.f32 %v944_v37, %v535_v21 }
 0x19d   : > { %v554_v25 = vmax.f32 %v536_v22, 0.0 }
 0x1a2   : > { %v537_v23 = vpop.f32.mrf.mxu3 }
 0x1a3   : > { %v538_v24 = vadd.f32 %v944_v37, %v537_v23 }
 0x1a5   : > { %v555_v26 = vmax.f32 %v538_v24, 0.0 }
 0x1a7   : > { %v563_v27 = vpack.c.bf16 %v555_v26, %v554_v25 }
 0x1a9   : > { %675 = vmatmul.bf16.gmra.mxu3 %v563_v27 }
 0x1b6   : > { %v641_v29 = vpop.f32.mrf.mxu2 }
 0x1b7   : > { %v642_v30 = vadd.f32 %v945_v28, %v641_v29 }
 0x1b9   : > { %681 = vst [vmem:[%s1214_s20] sm:$0xff] %v642_v30 }
 0x1be   : > { %v643_v31 = vpop.f32.mrf.mxu2 }
 0x1bf   : > { %v644_v32 = vadd.f32 %v945_v28, %v643_v31 }
 0x1c1   : > { %682 = vst [vmem:[%s1214_s20 + $0x8] sm:$0xff] %v644_v32 }
 0x1c6   : > { %v646_v33 = vpop.f32.mrf.mxu2 }
 0x1c7   : > { %v647_v34 = vadd.f32 %v945_v28, %v646_v33 }
 0x1c9   : > { %683 = vst [vmem:[%s1214_s20 + $0x10] sm:$0xff] %v647_v34 }
 0x1ce   : > { %v648_v36 = vpop.f32.mrf.mxu2 }
 0x1cf   : > { %v649_v37 = vadd.f32 %v945_v28, %v648_v36 }
 0x1d1   : > { %684 = vst [vmem:[%s1214_s20 + $0x18] sm:$0xff] %v649_v37 }
 0x1d6   : > { %v651_v38 = vpop.f32.mrf.mxu2 }
 0x1d7   : > { %v652_v39 = vadd.f32 %v945_v28, %v651_v38 }
 0x1d9   : > { %685 = vst [vmem:[%s1214_s20 + $0x20] sm:$0xff] %v652_v39 }
 0x1de   : > { %v653_v40 = vpop.f32.mrf.mxu2 }
 0x1df   : > { %v654_v41 = vadd.f32 %v945_v28, %v653_v40 }
 0x1e1   : > { %686 = vst [vmem:[%s1214_s20 + $0x28] sm:$0xff] %v654_v41 }
 0x1e6   : > { %v656_v42 = vpop.f32.mrf.mxu2 }
 0x1e7   : > { %v657_v43 = vadd.f32 %v945_v28, %v656_v42 }
 0x1e9   : > { %687 = vst [vmem:[%s1214_s20 + $0x30] sm:$0xff] %v657_v43 }
 0x1ee   : > { %v658_v44 = vpop.f32.mrf.mxu2 }
 0x1ef   : > { %v659_v45 = vadd.f32 %v945_v28, %v658_v44 }
 0x1f1   : > { %688 = vst [vmem:[%s1214_s20 + $0x38] sm:$0xff] %v659_v45 }
 0x1f6   : > { %v661_v46 = vpop.f32.mrf.mxu2 }
 0x1f7   : > { %v662_v35 = vadd.f32 %v945_v28, %v661_v46 }
 0x1f9   : > { %689 = vst [vmem:[%s1214_s20 + $0x40] sm:$0xff] %v662_v35 }
 0x1fe   : > { %v663_v47 = vpop.f32.mrf.mxu2 }
 0x1ff   : > { %v664_v48 = vadd.f32 %v945_v28, %v663_v47 }
 0x201   : > { %690 = vst [vmem:[%s1214_s20 + $0x48] sm:$0xff] %v664_v48 }
 0x206   : > { %v666_v49 = vpop.f32.mrf.mxu2 }
 0x207   : > { %v667_v50 = vadd.f32 %v945_v28, %v666_v49 }
 0x209   : > { %691 = vst [vmem:[%s1214_s20 + $0x50] sm:$0xff] %v667_v50 }
 0x20e   : > { %v668_v51 = vpop.f32.mrf.mxu2 }
 0x20f   : > { %v669_v52 = vadd.f32 %v945_v28, %v668_v51 }
 0x211   : > { %692 = vst [vmem:[%s1214_s20 + $0x58] sm:$0xff] %v669_v52 }
 0x21c   : > { %v671_v53 = vpop.f32.mrf.mxu3 }
 0x21d   : > { %v672_v54 = vadd.f32 %v945_v28, %v671_v53 }
 0x21f   : > { %693 = vst [vmem:[%s1214_s20 + $0x60] sm:$0xff] %v672_v54 }
 0x224   : > { %v673_v55 = vpop.f32.mrf.mxu3 }
 0x225   : > { %v674_v56 = vadd.f32 %v945_v28, %v673_v55 }
 0x227   : > { %694 = vst [vmem:[%s1214_s20 + $0x68] sm:$0xff] %v674_v56 }
 0x22c   : > { %v676_v57 = vpop.f32.mrf.mxu3 }
 0x22d   : > { %v677_v58 = vadd.f32 %v945_v28, %v676_v57 }
 0x22f   : > { %695 = vst [vmem:[%s1214_s20 + $0x70] sm:$0xff] %v677_v58 }
 0x234   : > { %v678_v59 = vpop.f32.mrf.mxu3 }
 0x235   : > { %v679_v60 = vadd.f32 %v945_v28, %v678_v59 }
 0x237   : > { %696 = vst [vmem:[%s1214_s20 + $0x78] sm:$0xff] %v679_v60 }
 0x238   : > { %973 = shalt.err (!%p970_p3)
}
 0x239   : > { %s1010_s16 = smov 128   ;;  %s1011_s20 = smov 8  }
 0x23a   : > { %902 = dma.vmem_to_hbm [thread:$0]  (%p1090_p5), %s711_s9, 2048, %s713_s21, %s698_s13, %s1010_s16, %s1010_s16, %s1011_s20  }
 0x23b PF: > { %p908_p4 = scmp.ge.s32.totalorder %s1008_s27, 2  ;;  %s727_s23 = sand.u32 1, %s996_s24  }
 0x23c   : > { %s728_s29 = scalar_lea.sflag [#allocation3], %s727_s23 }
 0x23d   : > { %p905_p7 = pnand %p908_p4, %p1094_p6 }
 0x23f   : > { %p906_p8 = pneg %p905_p7 }
 0x241   : > { %991 = dma.done.wait (%p906_p8), %s728_s29, 2048  }
 0x242   : > { %993 = vsyncadd (%p906_p8), %s728_s29, 4294965248  ;;  %p17_p9 = scmp.ge.s32.totalorder %s1077_s30, 5   ;;  %s1276_s24 = smov %s1000_s25 }
 0x243   : > { %s1277_s25 = smov %s1004_s26  ;;  %s1278_s26 = smov %s1088_s10 }
 0x244   : > { %s1279_s27 = smov %s1077_s30  ;;  %19 = sbr.rel (!%p17_p9) target bundleno = 3 (0x3), region = 83 }
 0x249   :  { %734 = vsyncpa [#allocation3], 1 }
 0x24a   :  { %736 = vsyncpa [#allocation3 + $0x1], 1 }

// kernel: tpu_custom_call.1
= control target key start
LH: loop header
LB: loop body
LE: loop exit
PB: predicated region body
PF: predicated region fallthrough
CT: control target
= control target key end

     0   :  { %12 = vsyncpa [#allocation3], 0  ;;  %s1266_s0 = inlined_call_operand.vmem [shape: f32[384,32], index: 0, kind: input, shape index: {}]   ;;  %s1267_s1 = inlined_call_operand.vmem [shape: bf16[32,128], index: 1, kind: input, shape index: {}]   ;;  %s1268_s2 = inlined_call_operand.vmem [shape: f32[1,128], index: 2, kind: input, shape index: {}]   ;;  %s1269_s3 = inlined_call_operand.vmem [shape: bf16[128,128], index: 3, kind: input, shape index: {}]   ;;  %s1270_s4 = inlined_call_operand.vmem [shape: f32[1,128], index: 4, kind: input, shape index: {}]   ;;  %s1271_s5 = inlined_call_operand.vmem [shape: bf16[128,128], index: 5, kind: input, shape index: {}]   ;;  %s1272_s6 = inlined_call_operand.vmem [shape: f32[1,128], index: 6, kind: input, shape index: {}]   ;;  %s1273_s7 = inlined_call_operand.hbm [shape: f32[384,128], index: 7, kind: output, shape index: {}]  }
   0x1   :  { %14 = vsyncpa [#allocation3 + $0x1], 0  ;;  %s1052_s24 = smov 0   ;;  %s1054_s25 = smov 0  }
   0x2   :  { %s1056_s26 = smov 0   ;;  %s1058_s27 = smov 0  }
   0x3 LB: > { %s1073_s28 = sadd.s32 4294967295, %s1008_s27   ;;  %s775_s29 = sadd.s32 4294967294, %s1008_s27   ;;  %s1008_s27 = sphi %s1058_s27, %s1279_s27   ;;  %s1004_s26 = sphi %s1056_s26, %s1278_s26   ;;  %s1000_s25 = sphi %s1054_s25, %s1277_s25   ;;  %s996_s24 = sphi %s1052_s24, %s1276_s24  }
   0x4   : > { %s1077_s30 = sadd.s32 1, %s1008_s27   ;;  %s179_s8 = sadd.s32 1, %s1004_s26 }
   0x5   : > { %s176_s9 = ssub.s32 %s1008_s27, %s1077_s30  ;;  %p189_p0 = scmp.ne.s32.totalorder %s1004_s26, %s1000_s25 }
   0x6   : > { %p177_p1 = scmp.eq.s32.totalorder %s176_s9, 0  ;;  %p190_p2 = scmp.eq.s32.totalorder %s1073_s28, 2 }
   0x7   : > { %p195_p3 = scmp.ne.s32.totalorder %s1000_s25, %s996_s24  ;;  %p196_p4 = scmp.eq.s32.totalorder %s775_s29, 2 }
   0x8   : > { %s1088_s10 = scalar_select %p177_p1, %s1004_s26, %s179_s8  }
   0x9   : > { %p1090_p5 = por %p190_p2, %p189_p0  ;;  %p1094_p6 = por %p196_p4, %p195_p3 }
   0xa   : > { %p778_p7 = scmp.ge.s32.totalorder %s1008_s27, 1  ;;  %p241_p8 = scmp.lt.s32.totalorder %s1008_s27, 4 }
   0xc   : > { %p242_p9 = pnand %p778_p7, %p241_p8 }
   0xd   : > { %s780_s15 = sshll.u32 (!%p242_p9), %s1073_s28, 4  ;;  %s270_s16 = sand.u32 (!%p242_p9), 1, %s1000_s25  }
   0xe   : > { %245 = sbr.rel (%p242_p9) target bundleno = 571 (0x23b), region = 48  ;;  %p274_p10 = scmp.lt.s32.totalorder (!%p242_p9), %s780_s15, 47 }
   0xf   : > { %s779_s17 = sshll.u32 (!%p242_p9), %s270_s16, 7  ;;  %s885_s22 = sshll.u32 (!%p242_p9), %s1073_s28, 7 }
  0x10   : > { %s1214_s20 = scalar_lea.vmem (!%p242_p9), [#allocation2], %s779_s17  ;;  %s709_s8 = scalar_lea.hbm (!%p242_p9), %s1273_s7, %s885_s22 }
  0x11   : > { %s710_s9 = sshll.u32 (!%p242_p9), %s1214_s20, 4  ;;  %s698_s13 = scalar_lea.sflag (!%p242_p9), [#allocation3], %s270_s16  ;;  %s711_s9 = int_to_ptr.vmem [resolvable:$true] %s710_s9 }
  0x13   : > { %v868_v0 = vld [vmem:[%s1267_s1 + $0x8] sm:$0xff]  ;;  %v867_v1 = vld [vmem:[%s1267_s1] sm:$0xff]  ;;  %s1281_s15 = smov (!%p274_p10, %s780_s15), 47  ;;  %vm325_vm0 = vcmask 261120   ;;  %v876_v17 = vld [vmem:[%s1269_s3 + $0x38] sm:$0xff] }
  0x14   : > { %356 = vmatpush.bf16.msra.mxu0 %v868_v0  ;;  %s781_s18 = sshll.u32 %s1281_s15, 3  ;;  %491 = vmatpush.bf16.msra.mxu1 %v876_v17  ;;  %v875_v21 = vld [vmem:[%s1269_s3 + $0x30] sm:$0xff]  ;;  %v874_v22 = vld [vmem:[%s1269_s3 + $0x28] sm:$0xff]  ;;  %v873_v23 = vld [vmem:[%s1269_s3 + $0x20] sm:$0xff] }
  0x15   : > { %s1110_s21 = scalar_lea.vmem %s1266_s0, %s781_s18  ;;  %886 = vmatpush.bf16.msra.mxu3 %v876_v17  ;;  %v872_v26 = vld [vmem:[%s1269_s3 + $0x18] sm:$0xff]  ;;  %v871_v28 = vld [vmem:[%s1269_s3 + $0x10] sm:$0xff]  ;;  %v870_v29 = vld [vmem:[%s1269_s3 + $0x8] sm:$0xff]  ;;  %s966_s18 = scalar_lea.hbm %s1273_s7, 384 }
  0x16   : > { %v281_v2 = vld [vmem:[%s1110_s21] sm:$0xff]  ;;  %v282_v3 = vld [vmem:[%s1110_s21 + $0x8] sm:$0xff]  ;;  %v283_v5 = vld [vmem:[%s1110_s21 + $0x10] sm:$0xff] }
  0x17   : > { %v297_v4 = vpack.c.bf16 %v282_v3, %v281_v2  ;;  %v284_v6 = vld [vmem:[%s1110_s21 + $0x18] sm:$0xff]  ;;  %v285_v8 = vld [vmem:[%s1110_s21 + $0x20] sm:$0xff]  ;;  %v286_v9 = vld [vmem:[%s1110_s21 + $0x28] sm:$0xff] }
  0x18   : > { %357 = vmatpush.bf16.msra.mxu0 %v867_v1  ;;  %v298_v7 = vpack.c.bf16 %v284_v6, %v283_v5  ;;  %v299_v10 = vpack.c.bf16 %v286_v9, %v285_v8  ;;  %v287_v11 = vld [vmem:[%s1110_s21 + $0x30] sm:$0xff]  ;;  %v288_v12 = vld [vmem:[%s1110_s21 + $0x38] sm:$0xff]  ;;  %v289_v14 = vld [vmem:[%s1110_s21 + $0x40] sm:$0xff]  ;;  %492 = vmatpush.bf16.msra.mxu1 %v875_v21 }
  0x19   : > { %v300_v13 = vpack.c.bf16 %v288_v12, %v287_v11  ;;  %v290_v15 = vld [vmem:[%s1110_s21 + $0x48] sm:$0xff]  ;;  %v291_v18 = vld [vmem:[%s1110_s21 + $0x50] sm:$0xff]  ;;  %v292_v19 = vld [vmem:[%s1110_s21 + $0x58] sm:$0xff]  ;;  %887 = vmatpush.bf16.msra.mxu3 %v875_v21 }
  0x1a   : > { %v301_v16 = vpack.c.bf16 %v290_v15, %v289_v14  ;;  %v302_v20 = vpack.c.bf16 %v292_v19, %v291_v18  ;;  %v293_v24 = vld [vmem:[%s1110_s21 + $0x60] sm:$0xff]  ;;  %v294_v25 = vld [vmem:[%s1110_s21 + $0x68] sm:$0xff]  ;;  %v295_v31 = vld [vmem:[%s1110_s21 + $0x70] sm:$0xff] }
  0x1b   : > { %790 = vmatmul.msk.bf16.vlgmr.msra.gmra.mxu0 %vm325_vm0, %v297_v4  ;;  %v303_v27 = vpack.c.bf16 %v294_v25, %v293_v24  ;;  %v869_v30 = vld [vmem:[%s1269_s3] sm:$0xff]  ;;  %v296_v32 = vld [vmem:[%s1110_s21 + $0x78] sm:$0xff]  ;;  %v883_v14 = vld [vmem:[%s1271_s5 + $0x30] sm:$0xff]  ;;  %s712_s21 = sshll.u32 %s709_s8, 4  ;;  %s713_s21 = int_to_ptr.hbm [resolvable:$true] %s712_s21 }
  0x1c   : > { %493 = vmatpush.bf16.msra.mxu1 %v874_v22  ;;  %v304_v33 = vpack.c.bf16 %v296_v32, %v295_v31  ;;  %v1163_v35 = vld [vmem:[%s1268_s2] ss:$0 sm:$0xff]  ;;  %v880_v21 = vld [vmem:[%s1271_s5 + $0x18] sm:$0xff]  ;;  %v879_v25 = vld [vmem:[%s1271_s5 + $0x10] sm:$0xff]  ;;  %s960_s14 = sshra.s32 %s713_s21, 4  ;;  %s961_s14 = int_to_ptr.hbm [resolvable:$true] %s960_s14 }
  0x1d   : > { %888 = vmatpush.bf16.msra.mxu3 %v874_v22  ;;  %v881_v17 = vld [vmem:[%s1271_s5 + $0x20] sm:$0xff]  ;;  %s962_s28 = scalar_lea.hbm %s961_s14, 128  ;;  %p967_p0 = scmp.lt.s32.totalorder %s961_s14, %s1273_s7 }
  0x1e   : > { %p963_p11 = scmp.ne.s32.totalorder %s961_s14, %s962_s28  ;;  %p968_p1 = scmp.lt.s32.totalorder %s966_s18, %s962_s28 }
  0x20   : > { %494 = vmatpush.bf16.msra.mxu1 %v873_v23  ;;  %p964_p12 = pnand %p963_p11, %p1090_p5  ;;  %p969_p2 = por %p968_p1, %p967_p0 }
  0x21   : > { %889 = vmatpush.bf16.msra.mxu3 %v873_v23 }
  0x22   : > { %p965_p13 = pneg %p964_p12 }
  0x24   : > { %495 = vmatpush.bf16.msra.mxu1 %v872_v26  ;;  %p970_p3 = pnand %p969_p2, %p965_p13 }
  0x25   : > { %890 = vmatpush.bf16.msra.mxu3 %v872_v26 }
  0x28   : > { %496 = vmatpush.bf16.msra.mxu1 %v871_v28 }
  0x29   : > { %891 = vmatpush.bf16.msra.mxu3 %v871_v28  ;;  %v877_v28 = vld [vmem:[%s1271_s5] sm:$0xff] }
  0x2b   : > { %791 = vmatmul.msk.bf16.gmra.mxu0 %vm325_vm0, %v298_v7 }
  0x2c   : > { %497 = vmatpush.bf16.msra.mxu1 %v870_v29 }
  0x2d   : > { %892 = vmatpush.bf16.msra.mxu3 %v870_v29 }
  0x30   : > { %498 = vmatpush.bf16.msra.mxu1 %v869_v30 }
  0x31   : > { %893 = vmatpush.bf16.msra.mxu3 %v869_v30 }
  0x3b   : > { %792 = vmatmul.msk.bf16.gmra.mxu0 %vm325_vm0, %v299_v10  ;;  %v884_v10 = vld [vmem:[%s1271_s5 + $0x38] sm:$0xff] }
  0x3c   : > { %632 = vmatpush.bf16.msra.mxu2 %v884_v10  ;;  %894 = vmatpush.bf16.msrb.mxu3 %v884_v10 }
  0x40   : > { %633 = vmatpush.bf16.msra.mxu2 %v883_v14  ;;  %895 = vmatpush.bf16.msrb.mxu3 %v883_v14 }
  0x4b   : > { %793 = vmatmul.msk.bf16.gmra.mxu0 %vm325_vm0, %v300_v13 }
  0x5b   : > { %794 = vmatmul.msk.bf16.gmra.mxu0 %vm325_vm0, %v301_v16  ;;  %v882_v16 = vld [vmem:[%s1271_s5 + $0x28] sm:$0xff] }
  0x5c   : > { %634 = vmatpush.bf16.msra.mxu2 %v882_v16  ;;  %896 = vmatpush.bf16.msrb.mxu3 %v882_v16 }
  0x60   : > { %635 = vmatpush.bf16.msra.mxu2 %v881_v17  ;;  %897 = vmatpush.bf16.msrb.mxu3 %v881_v17 }
  0x64   : > { %636 = vmatpush.bf16.msra.mxu2 %v880_v21  ;;  %898 = vmatpush.bf16.msrb.mxu3 %v880_v21 }
  0x68   : > { %637 = vmatpush.bf16.msra.mxu2 %v879_v25  ;;  %899 = vmatpush.bf16.msrb.mxu3 %v879_v25 }
  0x6b   : > { %795 = vmatmul.msk.bf16.gmra.mxu0 %vm325_vm0, %v302_v20 }
  0x7b   : > { %796 = vmatmul.msk.bf16.gmra.mxu0 %vm325_vm0, %v303_v27  ;;  %v878_v27 = vld [vmem:[%s1271_s5 + $0x8] sm:$0xff] }
  0x7c   : > { %638 = vmatpush.bf16.msra.mxu2 %v878_v27  ;;  %900 = vmatpush.bf16.msrb.mxu3 %v878_v27 }
  0x80   : > { %639 = vmatpush.bf16.msra.mxu2 %v877_v28  ;;  %901 = vmatpush.bf16.msrb.mxu3 %v877_v28  ;;  %v945_v28 = vld [vmem:[%s1272_s6] ss:$0 sm:$0xff] }
  0x8b   : > { %797 = vmatmul.msk.bf16.gmra.mxu0 %vm325_vm0, %v304_v33 }
  0x98   : > { %v359_v34 = vpop.f32.mrf.mxu0 }
  0x99   : > { %v360_v36 = vadd.f32 %v1163_v35, %v359_v34 }
  0x9b   : > { %v399_v39 = vmax.f32 %v360_v36, 0.0 }
  0xa0   : > { %v361_v37 = vpop.f32.mrf.mxu0 }
  0xa1   : > { %v362_v38 = vadd.f32 %v1163_v35, %v361_v37  ;;  %v944_v37 = vld [vmem:[%s1270_s4] ss:$0 sm:$0xff] }
  0xa3   : > { %v400_v40 = vmax.f32 %v362_v38, 0.0 }
  0xa5   : > { %v415_v41 = vpack.c.bf16 %v400_v40, %v399_v39 }
  0xa7   : > { %499 = vmatmul.bf16.vlgmr.msra.gmra.mxu1 %v415_v41 }
  0xa8   : > { %v364_v42 = vpop.f32.mrf.mxu0 }
  0xa9   : > { %v365_v43 = vadd.f32 %v1163_v35, %v364_v42 }
  0xab   : > { %v401_v46 = vmax.f32 %v365_v43, 0.0 }
  0xb0   : > { %v366_v44 = vpop.f32.mrf.mxu0 }
  0xb1   : > { %v367_v45 = vadd.f32 %v1163_v35, %v366_v44 }
  0xb3   : > { %v402_v47 = vmax.f32 %v367_v45, 0.0 }
  0xb5   : > { %v416_v48 = vpack.c.bf16 %v402_v47, %v401_v46 }
  0xb7   : > { %504 = vmatmul.bf16.gmra.mxu1 %v416_v48 }
  0xb8   : > { %v369_v49 = vpop.f32.mrf.mxu0 }
  0xb9   : > { %v370_v50 = vadd.f32 %v1163_v35, %v369_v49 }
  0xbb   : > { %v403_v53 = vmax.f32 %v370_v50, 0.0 }
  0xc0   : > { %v371_v51 = vpop.f32.mrf.mxu0 }
  0xc1   : > { %v372_v52 = vadd.f32 %v1163_v35, %v371_v51 }
  0xc3   : > { %v404_v54 = vmax.f32 %v372_v52, 0.0 }
  0xc5   : > { %v417_v55 = vpack.c.bf16 %v404_v54, %v403_v53 }
  0xc7   : > { %509 = vmatmul.bf16.gmra.mxu1 %v417_v55 }
  0xc8   : > { %v374_v56 = vpop.f32.mrf.mxu0 }
  0xc9   : > { %v375_v57 = vadd.f32 %v1163_v35, %v374_v56 }
  0xcb   : > { %v405_v60 = vmax.f32 %v375_v57, 0.0 }
  0xd0   : > { %v376_v58 = vpop.f32.mrf.mxu0 }
  0xd1   : > { %v377_v59 = vadd.f32 %v1163_v35, %v376_v58 }
  0xd3   : > { %v406_v61 = vmax.f32 %v377_v59, 0.0 }
  0xd5   : > { %v418_v62 = vpack.c.bf16 %v406_v61, %v405_v60 }
  0xd7   : > { %514 = vmatmul.bf16.gmra.mxu1 %v418_v62 }
  0xd8   : > { %v379_v63 = vpop.f32.mrf.mxu0 }
  0xd9   : > { %v380_v0 = vadd.f32 %v1163_v35, %v379_v63 }
  0xdb   : > { %v407_v3 = vmax.f32 %v380_v0, 0.0 }
  0xe0   : > { %v381_v1 = vpop.f32.mrf.mxu0 }
  0xe1   : > { %v382_v2 = vadd.f32 %v1163_v35, %v381_v1 }
  0xe3   : > { %v408_v4 = vmax.f32 %v382_v2, 0.0 }
  0xe5   : > { %v419_v5 = vpack.c.bf16 %v408_v4, %v407_v3 }
  0xe7   : > { %519 = vmatmul.bf16.gmra.mxu1 %v419_v5 }
  0xe8   : > { %v384_v6 = vpop.f32.mrf.mxu0 }
  0xe9   : > { %v385_v7 = vadd.f32 %v1163_v35, %v384_v6 }
  0xeb   : > { %v409_v11 = vmax.f32 %v385_v7, 0.0 }
  0xf0   : > { %v386_v8 = vpop.f32.mrf.mxu0 }
  0xf1   : > { %v387_v9 = vadd.f32 %v1163_v35, %v386_v8 }
  0xf3   : > { %v410_v12 = vmax.f32 %v387_v9, 0.0 }
  0xf5   : > { %v420_v13 = vpack.c.bf16 %v410_v12, %v409_v11 }
  0xf7   : > { %524 = vmatmul.bf16.gmra.mxu1 %v420_v13 }
  0xf8   : > { %v389_v15 = vpop.f32.mrf.mxu0 }
  0xf9   : > { %v390_v18 = vadd.f32 %v1163_v35, %v389_v15 }
  0xfb   : > { %v411_v22 = vmax.f32 %v390_v18, 0.0 }
 0x100   : > { %v391_v19 = vpop.f32.mrf.mxu0 }
 0x101   : > { %v392_v20 = vadd.f32 %v1163_v35, %v391_v19 }
 0x103   : > { %v412_v23 = vmax.f32 %v392_v20, 0.0 }
 0x105   : > { %v421_v24 = vpack.c.bf16 %v412_v23, %v411_v22 }
 0x107   : > { %529 = vmatmul.bf16.vlgmr.msra.gmra.mxu3 %v421_v24 }
 0x108   : > { %v394_v26 = vpop.f32.mrf.mxu0 }
 0x109   : > { %v395_v29 = vadd.f32 %v1163_v35, %v394_v26 }
 0x10b   : > { %v413_v32 = vmax.f32 %v395_v29, 0.0 }
 0x110   : > { %v396_v30 = vpop.f32.mrf.mxu0 }
 0x111   : > { %v397_v31 = vadd.f32 %v1163_v35, %v396_v30 }
 0x113   : > { %v414_v33 = vmax.f32 %v397_v31, 0.0 }
 0x115   : > { %v422_v34 = vpack.c.bf16 %v414_v33, %v413_v32 }
 0x117   : > { %534 = vmatmul.bf16.gmra.mxu3 %v422_v34 }
 0x124   : > { %v500_v36 = vpop.f32.mrf.mxu1 }
 0x125   : > { %v501_v38 = vadd.f32 %v944_v37, %v500_v36 }
 0x127   : > { %v540_v41 = vmax.f32 %v501_v38, 0.0 }
 0x12c   : > { %v502_v39 = vpop.f32.mrf.mxu1 }
 0x12d   : > { %v503_v40 = vadd.f32 %v944_v37, %v502_v39 }
 0x12f   : > { %v541_v42 = vmax.f32 %v503_v40, 0.0 }
 0x131   : > { %v556_v43 = vpack.c.bf16 %v541_v42, %v540_v41 }
 0x133   : > { %640 = vmatmul.bf16.vlgmr.msra.gmra.mxu2 %v556_v43 }
 0x134   : > { %v505_v44 = vpop.f32.mrf.mxu1 }
 0x135   : > { %v506_v45 = vadd.f32 %v944_v37, %v505_v44 }
 0x137   : > { %v542_v47 = vmax.f32 %v506_v45, 0.0 }
 0x13c   : > { %v507_v46 = vpop.f32.mrf.mxu1 }
 0x13d   : > { %v508_v35 = vadd.f32 %v944_v37, %v507_v46 }
 0x13f   : > { %v543_v48 = vmax.f32 %v508_v35, 0.0 }
 0x141   : > { %v557_v49 = vpack.c.bf16 %v543_v48, %v542_v47 }
 0x143   : > { %645 = vmatmul.bf16.gmra.mxu2 %v557_v49 }
 0x144   : > { %v510_v50 = vpop.f32.mrf.mxu1 }
 0x145   : > { %v511_v51 = vadd.f32 %v944_v37, %v510_v50 }
 0x147   : > { %v544_v54 = vmax.f32 %v511_v51, 0.0 }
 0x14c   : > { %v512_v52 = vpop.f32.mrf.mxu1 }
 0x14d   : > { %v513_v53 = vadd.f32 %v944_v37, %v512_v52 }
 0x14f   : > { %v545_v55 = vmax.f32 %v513_v53, 0.0 }
 0x151   : > { %v558_v56 = vpack.c.bf16 %v545_v55, %v544_v54 }
 0x153   : > { %650 = vmatmul.bf16.gmra.mxu2 %v558_v56 }
 0x154   : > { %v515_v57 = vpop.f32.mrf.mxu1 }
 0x155   : > { %v516_v58 = vadd.f32 %v944_v37, %v515_v57 }
 0x157   : > { %v546_v61 = vmax.f32 %v516_v58, 0.0 }
 0x15c   : > { %v517_v59 = vpop.f32.mrf.mxu1 }
 0x15d   : > { %v518_v60 = vadd.f32 %v944_v37, %v517_v59 }
 0x15f   : > { %v547_v62 = vmax.f32 %v518_v60, 0.0 }
 0x161   : > { %v559_v63 = vpack.c.bf16 %v547_v62, %v546_v61 }
 0x163   : > { %655 = vmatmul.bf16.gmra.mxu2 %v559_v63 }
 0x164   : > { %v520_v0 = vpop.f32.mrf.mxu1 }
 0x165   : > { %v521_v1 = vadd.f32 %v944_v37, %v520_v0 }
 0x167   : > { %v548_v4 = vmax.f32 %v521_v1, 0.0 }
 0x16c   : > { %v522_v2 = vpop.f32.mrf.mxu1 }
 0x16d   : > { %v523_v3 = vadd.f32 %v944_v37, %v522_v2 }
 0x16f   : > { %v549_v5 = vmax.f32 %v523_v3, 0.0 }
 0x171   : > { %v560_v6 = vpack.c.bf16 %v549_v5, %v548_v4 }
 0x173   : > { %660 = vmatmul.bf16.gmra.mxu2 %v560_v6 }
 0x174   : > { %v525_v7 = vpop.f32.mrf.mxu1 }
 0x175   : > { %v526_v8 = vadd.f32 %v944_v37, %v525_v7 }
 0x177   : > { %v550_v11 = vmax.f32 %v526_v8, 0.0 }
 0x17c   : > { %v527_v9 = vpop.f32.mrf.mxu1 }
 0x17d   : > { %v528_v10 = vadd.f32 %v944_v37, %v527_v9 }
 0x17f   : > { %v551_v12 = vmax.f32 %v528_v10, 0.0 }
 0x181   : > { %v561_v13 = vpack.c.bf16 %v551_v12, %v550_v11 }
 0x183   : > { %665 = vmatmul.bf16.gmra.mxu2 %v561_v13 }
 0x18a   : > { %v530_v14 = vpop.f32.mrf.mxu3 }
 0x18b   : > { %v531_v15 = vadd.f32 %v944_v37, %v530_v14 }
 0x18d   : > { %v552_v18 = vmax.f32 %v531_v15, 0.0 }
 0x192   : > { %v532_v16 = vpop.f32.mrf.mxu3 }
 0x193   : > { %v533_v17 = vadd.f32 %v944_v37, %v532_v16 }
 0x195   : > { %v553_v19 = vmax.f32 %v533_v17, 0.0 }
 0x197   : > { %v562_v20 = vpack.c.bf16 %v553_v19, %v552_v18 }
 0x199   : > { %670 = vmatmul.bf16.vlgmr.msrb.gmra.mxu3 %v562_v20 }
 0x19a   : > { %v535_v21 = vpop.f32.mrf.mxu3 }
 0x19b   : > { %v536_v22 = vadd.f32 %v944_v37, %v535_v21 }
 0x19d   : > { %v554_v25 = vmax.f32 %v536_v22, 0.0 }
 0x1a2   : > { %v537_v23 = vpop.f32.mrf.mxu3 }
 0x1a3   : > { %v538_v24 = vadd.f32 %v944_v37, %v537_v23 }
 0x1a5   : > { %v555_v26 = vmax.f32 %v538_v24, 0.0 }
 0x1a7   : > { %v563_v27 = vpack.c.bf16 %v555_v26, %v554_v25 }
 0x1a9   : > { %675 = vmatmul.bf16.gmra.mxu3 %v563_v27 }
 0x1b6   : > { %v641_v29 = vpop.f32.mrf.mxu2 }
 0x1b7   : > { %v642_v30 = vadd.f32 %v945_v28, %v641_v29 }
 0x1b9   : > { %681 = vst [vmem:[%s1214_s20] sm:$0xff] %v642_v30 }
 0x1be   : > { %v643_v31 = vpop.f32.mrf.mxu2 }
 0x1bf   : > { %v644_v32 = vadd.f32 %v945_v28, %v643_v31 }
 0x1c1   : > { %682 = vst [vmem:[%s1214_s20 + $0x8] sm:$0xff] %v644_v32 }
 0x1c6   : > { %v646_v33 = vpop.f32.mrf.mxu2 }
 0x1c7   : > { %v647_v34 = vadd.f32 %v945_v28, %v646_v33 }
 0x1c9   : > { %683 = vst [vmem:[%s1214_s20 + $0x10] sm:$0xff] %v647_v34 }
 0x1ce   : > { %v648_v36 = vpop.f32.mrf.mxu2 }
 0x1cf   : > { %v649_v37 = vadd.f32 %v945_v28, %v648_v36 }
 0x1d1   : > { %684 = vst [vmem:[%s1214_s20 + $0x18] sm:$0xff] %v649_v37 }
 0x1d6   : > { %v651_v38 = vpop.f32.mrf.mxu2 }
 0x1d7   : > { %v652_v39 = vadd.f32 %v945_v28, %v651_v38 }
 0x1d9   : > { %685 = vst [vmem:[%s1214_s20 + $0x20] sm:$0xff] %v652_v39 }
 0x1de   : > { %v653_v40 = vpop.f32.mrf.mxu2 }
 0x1df   : > { %v654_v41 = vadd.f32 %v945_v28, %v653_v40 }
 0x1e1   : > { %686 = vst [vmem:[%s1214_s20 + $0x28] sm:$0xff] %v654_v41 }
 0x1e6   : > { %v656_v42 = vpop.f32.mrf.mxu2 }
 0x1e7   : > { %v657_v43 = vadd.f32 %v945_v28, %v656_v42 }
 0x1e9   : > { %687 = vst [vmem:[%s1214_s20 + $0x30] sm:$0xff] %v657_v43 }
 0x1ee   : > { %v658_v44 = vpop.f32.mrf.mxu2 }
 0x1ef   : > { %v659_v45 = vadd.f32 %v945_v28, %v658_v44 }
 0x1f1   : > { %688 = vst [vmem:[%s1214_s20 + $0x38] sm:$0xff] %v659_v45 }
 0x1f6   : > { %v661_v46 = vpop.f32.mrf.mxu2 }
 0x1f7   : > { %v662_v35 = vadd.f32 %v945_v28, %v661_v46 }
 0x1f9   : > { %689 = vst [vmem:[%s1214_s20 + $0x40] sm:$0xff] %v662_v35 }
 0x1fe   : > { %v663_v47 = vpop.f32.mrf.mxu2 }
 0x1ff   : > { %v664_v48 = vadd.f32 %v945_v28, %v663_v47 }
 0x201   : > { %690 = vst [vmem:[%s1214_s20 + $0x48] sm:$0xff] %v664_v48 }
 0x206   : > { %v666_v49 = vpop.f32.mrf.mxu2 }
 0x207   : > { %v667_v50 = vadd.f32 %v945_v28, %v666_v49 }
 0x209   : > { %691 = vst [vmem:[%s1214_s20 + $0x50] sm:$0xff] %v667_v50 }
 0x20e   : > { %v668_v51 = vpop.f32.mrf.mxu2 }
 0x20f   : > { %v669_v52 = vadd.f32 %v945_v28, %v668_v51 }
 0x211   : > { %692 = vst [vmem:[%s1214_s20 + $0x58] sm:$0xff] %v669_v52 }
 0x21c   : > { %v671_v53 = vpop.f32.mrf.mxu3 }
 0x21d   : > { %v672_v54 = vadd.f32 %v945_v28, %v671_v53 }
 0x21f   : > { %693 = vst [vmem:[%s1214_s20 + $0x60] sm:$0xff] %v672_v54 }
 0x224   : > { %v673_v55 = vpop.f32.mrf.mxu3 }
 0x225   : > { %v674_v56 = vadd.f32 %v945_v28, %v673_v55 }
 0x227   : > { %694 = vst [vmem:[%s1214_s20 + $0x68] sm:$0xff] %v674_v56 }
 0x22c   : > { %v676_v57 = vpop.f32.mrf.mxu3 }
 0x22d   : > { %v677_v58 = vadd.f32 %v945_v28, %v676_v57 }
 0x22f   : > { %695 = vst [vmem:[%s1214_s20 + $0x70] sm:$0xff] %v677_v58 }
 0x234   : > { %v678_v59 = vpop.f32.mrf.mxu3 }
 0x235   : > { %v679_v60 = vadd.f32 %v945_v28, %v678_v59 }
 0x237   : > { %696 = vst [vmem:[%s1214_s20 + $0x78] sm:$0xff] %v679_v60 }
 0x238   : > { %973 = shalt.err (!%p970_p3)
}
 0x239   : > { %s1010_s16 = smov 128   ;;  %s1011_s20 = smov 8  }
 0x23a   : > { %902 = dma.vmem_to_hbm [thread:$0]  (%p1090_p5), %s711_s9, 2048, %s713_s21, %s698_s13, %s1010_s16, %s1010_s16, %s1011_s20  }
 0x23b PF: > { %p908_p4 = scmp.ge.s32.totalorder %s1008_s27, 2  ;;  %s727_s23 = sand.u32 1, %s996_s24  }
 0x23c   : > { %s728_s29 = scalar_lea.sflag [#allocation3], %s727_s23 }
 0x23d   : > { %p905_p7 = pnand %p908_p4, %p1094_p6 }
 0x23f   : > { %p906_p8 = pneg %p905_p7 }
 0x241   : > { %991 = dma.done.wait (%p906_p8), %s728_s29, 2048  }
 0x242   : > { %993 = vsyncadd (%p906_p8), %s728_s29, 4294965248  ;;  %p17_p9 = scmp.ge.s32.totalorder %s1077_s30, 5   ;;  %s1276_s24 = smov %s1000_s25 }
 0x243   : > { %s1277_s25 = smov %s1004_s26  ;;  %s1278_s26 = smov %s1088_s10 }
 0x244   : > { %s1279_s27 = smov %s1077_s30  ;;  %19 = sbr.rel (!%p17_p9) target bundleno = 3 (0x3), region = 83 }
 0x249   :  { %734 = vsyncpa [#allocation3], 1 }
 0x24a   :  { %736 = vsyncpa [#allocation3 + $0x1], 1 }

</bundles_post_ra>
